<compile_context>
chip_gen: v5e
topology: v5e:2x2
jax: 0.10.0
libtpu: 0.0.40
codegen_flags: <defaults>
</compile_context>

<pallas_src>
import jax
import jax.numpy as jnp
from jax import lax
from jax.experimental import pallas as pl
from jax.experimental.pallas import tpu as pltpu

INPUT_SIZE = 9
H1, H2, H3, H4 = 128, 64, 32, 16
OUTPUT_SIZE = 8
BN_EPS = 1e-5
MAX_TB = 2048  # batch tile: >=1024 amortizes per-step overhead, << VMEM limits


# --------------------------------------------------------------------------
# Kernel: 5 fused matmuls on one batch tile.  BN already folded into W/b.
# --------------------------------------------------------------------------
def tabular_kernel(x_ref,
                   w1_ref, b1_ref, w2_ref, b2_ref, w3_ref, b3_ref,
                   w4_ref, b4_ref, w5_ref, b5_ref,
                   out_ref):
    def layer(h, w_ref, b_ref, relu):
        y = jnp.dot(h, w_ref[...], preferred_element_type=jnp.float32) + b_ref[...]
        if relu:
            # ReLU in f32, then narrow to bf16 for the next MXU pass.
            return jnp.maximum(y, 0.0).astype(jnp.bfloat16)
        return y

    h = x_ref[...].astype(jnp.bfloat16)
    h = layer(h, w1_ref, b1_ref, relu=True)
    h = layer(h, w2_ref, b2_ref, relu=True)
    h = layer(h, w3_ref, b3_ref, relu=True)
    h = layer(h, w4_ref, b4_ref, relu=True)
    # TODO(synk): Dropout layers are identity in eval mode and are omitted.
    out_ref[...] = layer(h, w5_ref, b5_ref, relu=False)


# --------------------------------------------------------------------------
# Wrapper: batch-tiled grid, resident weights, cost estimate.
# --------------------------------------------------------------------------
def tabular_forward(x, folded_params, *, tb=MAX_TB):
    batch = x.shape[0]
    tb = int(min(tb, max(8, pl.cdiv(batch, 8) * 8)))
    n_tiles = pl.cdiv(batch, tb)
    padded = n_tiles * tb
    if padded != batch:
        x = jnp.pad(x, ((0, padded - batch), (0, 0)))

    x_spec = pl.BlockSpec((tb, INPUT_SIZE), lambda i: (i, 0))
    out_spec = pl.BlockSpec((tb, OUTPUT_SIZE), lambda i: (i, 0))
    # Full-array blocks + constant index_map -> params DMA'd once, stay resident.
    param_specs = [pl.BlockSpec(p.shape, lambda i: (0, 0)) for p in folded_params]

    flops = 2 * padded * (INPUT_SIZE * H1 + H1 * H2 + H2 * H3 + H3 * H4
                          + H4 * OUTPUT_SIZE)
    param_bytes = sum(int(p.size) * p.dtype.itemsize for p in folded_params)
    bytes_accessed = padded * INPUT_SIZE * 4 + padded * OUTPUT_SIZE * 4 + param_bytes

    out = pl.pallas_call(
        tabular_kernel,
        out_shape=jax.ShapeDtypeStruct((padded, OUTPUT_SIZE), jnp.float32),
        grid=(n_tiles,),
        in_specs=[x_spec] + param_specs,
        out_specs=out_spec,
        compiler_params=pltpu.CompilerParams(
            dimension_semantics=("parallel",)),
        cost_estimate=pl.CostEstimate(flops=flops, transcendentals=0,
                                      bytes_accessed=bytes_accessed),
    )(x, *folded_params)
    return out[:batch]


# --------------------------------------------------------------------------
# Parameter construction: PyTorch-style raw params, then offline BN folding.
# --------------------------------------------------------------------------
def init_raw_params(key):
    """Deterministic init mirroring the PyTorch module's shapes (f32)."""
    dims = [(INPUT_SIZE, H1), (H1, H2), (H2, H3), (H3, H4), (H4, OUTPUT_SIZE)]
    keys = jax.random.split(key, 32)
    ki = iter(range(32))
    params = []
    for li, (fan_in, fan_out) in enumerate(dims):
        bound = 1.0 / jnp.sqrt(fan_in)
        w = jax.random.uniform(keys[next(ki)], (fan_in, fan_out),
                               jnp.float32, -bound, bound)  # (in, out) = W.T
        b = jax.random.uniform(keys[next(ki)], (1, fan_out),
                               jnp.float32, -bound, bound)
        params += [w, b]
        if li < 4:  # BN after the first four linears only
            g = 1.0 + 0.1 * jax.random.normal(keys[next(ki)], (1, fan_out), jnp.float32)
            beta = 0.1 * jax.random.normal(keys[next(ki)], (1, fan_out), jnp.float32)
            mean = 0.1 * jax.random.normal(keys[next(ki)], (1, fan_out), jnp.float32)
            var = jnp.abs(jax.random.normal(keys[next(ki)], (1, fan_out),
                                            jnp.float32)) + 0.5
            params += [g, beta, mean, var]
    return params


def fold_params(raw_params):
    """Fold eval-mode BN (+ bias) into W/b once, offline.  W' -> bf16, b' -> f32."""
    p = list(raw_params)
    folded = []
    for li in range(5):
        w, b = p.pop(0), p.pop(0)
        if li < 4:
            g, beta, mean, var = p.pop(0), p.pop(0), p.pop(0), p.pop(0)
            scale = g * lax.rsqrt(var + BN_EPS)          # (1, out)
            w = w * scale                                # columns scaled
            b = (b - mean) * scale + beta
        folded += [w.astype(jnp.bfloat16), b.astype(jnp.float32)]
    return folded


# --------------------------------------------------------------------------
# Pure-JAX reference with identical (folded, bf16-matmul) semantics.
# --------------------------------------------------------------------------
def reference_forward(x, folded_params):
    h = x
    for li in range(5):
        w, b = folded_params[2 * li], folded_params[2 * li + 1]
        h = jnp.dot(h.astype(w.dtype), w,
                    preferred_element_type=jnp.float32) + b
        if li < 4:
            h = jnp.maximum(h, 0.0)
    return h


if __name__ == "__main__":
    key = jax.random.PRNGKey(0)
    kx, kp = jax.random.split(key)

    batch = 100                       # small; non-multiple of tile -> exercises padding
    x = jax.random.normal(kx, (batch, INPUT_SIZE), jnp.float32)
    params = fold_params(init_raw_params(kp))

    out = tabular_forward(x, params, tb=64)   # grid of 2 tiles + padded tail
    out = jax.block_until_ready(out)

    ref = reference_forward(x, params)
    assert out.shape == (batch, OUTPUT_SIZE), out.shape
    assert jnp.allclose(out, ref, atol=1e-3, rtol=1e-3), (
        float(jnp.max(jnp.abs(out - ref)))
    )
    print("KERNEL_OK")
</pallas_src>

<mosaic_0001>
module attributes {stable_mosaic.version = 11 : i64} {
  func.func @tabular_kernel(%arg0: i32, %arg1: memref<64x9xf32, #tpu.memory_space<vmem>>, %arg2: memref<9x128xbf16, #tpu.memory_space<vmem>>, %arg3: memref<1x128xf32, #tpu.memory_space<vmem>>, %arg4: memref<128x64xbf16, #tpu.memory_space<vmem>>, %arg5: memref<1x64xf32, #tpu.memory_space<vmem>>, %arg6: memref<64x32xbf16, #tpu.memory_space<vmem>>, %arg7: memref<1x32xf32, #tpu.memory_space<vmem>>, %arg8: memref<32x16xbf16, #tpu.memory_space<vmem>>, %arg9: memref<1x16xf32, #tpu.memory_space<vmem>>, %arg10: memref<16x8xbf16, #tpu.memory_space<vmem>>, %arg11: memref<1x8xf32, #tpu.memory_space<vmem>>, %arg12: memref<64x8xf32, #tpu.memory_space<vmem>>) attributes {dimension_semantics = [#tpu.dimension_semantics<parallel>], iteration_bounds = array<i64: 2>, scalar_prefetch = 0 : i64, scratch_operands = 0 : i64, tpu.core_type = #tpu.core_type<tc>, window_params = [{transform_indices = @transform_0, window_bounds = array<i64: 64, 9>}, {pipeline_mode = #tpu.pipeline_mode<synchronous>, transform_indices = @transform_1, window_bounds = array<i64: 9, 128>}, {pipeline_mode = #tpu.pipeline_mode<synchronous>, transform_indices = @transform_2, window_bounds = array<i64: 1, 128>}, {pipeline_mode = #tpu.pipeline_mode<synchronous>, transform_indices = @transform_3, window_bounds = array<i64: 128, 64>}, {pipeline_mode = #tpu.pipeline_mode<synchronous>, transform_indices = @transform_4, window_bounds = array<i64: 1, 64>}, {pipeline_mode = #tpu.pipeline_mode<synchronous>, transform_indices = @transform_5, window_bounds = array<i64: 64, 32>}, {pipeline_mode = #tpu.pipeline_mode<synchronous>, transform_indices = @transform_6, window_bounds = array<i64: 1, 32>}, {pipeline_mode = #tpu.pipeline_mode<synchronous>, transform_indices = @transform_7, window_bounds = array<i64: 32, 16>}, {pipeline_mode = #tpu.pipeline_mode<synchronous>, transform_indices = @transform_8, window_bounds = array<i64: 1, 16>}, {pipeline_mode = #tpu.pipeline_mode<synchronous>, transform_indices = @transform_9, window_bounds = array<i64: 16, 8>}, {pipeline_mode = #tpu.pipeline_mode<synchronous>, transform_indices = @transform_10, window_bounds = array<i64: 1, 8>}, {transform_indices = @transform_11, window_bounds = array<i64: 64, 8>}]} {
    %c0 = arith.constant 0 : index
    %c0_0 = arith.constant 0 : index
    %0 = vector.load %arg1[%c0, %c0_0] : memref<64x9xf32, #tpu.memory_space<vmem>>, vector<64x9xf32>
    %1 = arith.truncf %0 : vector<64x9xf32> to vector<64x9xbf16>
    %c0_1 = arith.constant 0 : index
    %c0_2 = arith.constant 0 : index
    %2 = vector.load %arg2[%c0_1, %c0_2] : memref<9x128xbf16, #tpu.memory_space<vmem>>, vector<9x128xbf16>
    %cst = arith.constant dense<0.000000e+00> : vector<64x128xf32>
    %3 = tpu.matmul %1, %2, %cst {dimension_numbers = #tpu.dot_dimension_numbers<[1], [0], [0], [1], [0, 0, 1, 1], [], []>} : vector<64x9xbf16>, vector<9x128xbf16>, vector<64x128xf32> -> vector<64x128xf32>
    %c0_3 = arith.constant 0 : index
    %c0_4 = arith.constant 0 : index
    %4 = vector.load %arg3[%c0_3, %c0_4] : memref<1x128xf32, #tpu.memory_space<vmem>>, vector<1x128xf32>
    %5 = vector.broadcast %4 : vector<1x128xf32> to vector<64x128xf32>
    %6 = arith.addf %3, %5 : vector<64x128xf32>
    %cst_5 = arith.constant 0.000000e+00 : f32
    %7 = vector.broadcast %cst_5 : f32 to vector<64x128xf32>
    %8 = arith.maximumf %6, %7 : vector<64x128xf32>
    %9 = arith.truncf %8 : vector<64x128xf32> to vector<64x128xbf16>
    %c0_6 = arith.constant 0 : index
    %c0_7 = arith.constant 0 : index
    %10 = vector.load %arg4[%c0_6, %c0_7] : memref<128x64xbf16, #tpu.memory_space<vmem>>, vector<128x64xbf16>
    %cst_8 = arith.constant dense<0.000000e+00> : vector<64x64xf32>
    %11 = tpu.matmul %9, %10, %cst_8 {dimension_numbers = #tpu.dot_dimension_numbers<[1], [0], [0], [1], [0, 0, 1, 1], [], []>} : vector<64x128xbf16>, vector<128x64xbf16>, vector<64x64xf32> -> vector<64x64xf32>
    %c0_9 = arith.constant 0 : index
    %c0_10 = arith.constant 0 : index
    %12 = vector.load %arg5[%c0_9, %c0_10] : memref<1x64xf32, #tpu.memory_space<vmem>>, vector<1x64xf32>
    %13 = vector.broadcast %12 : vector<1x64xf32> to vector<64x64xf32>
    %14 = arith.addf %11, %13 : vector<64x64xf32>
    %cst_11 = arith.constant 0.000000e+00 : f32
    %15 = vector.broadcast %cst_11 : f32 to vector<64x64xf32>
    %16 = arith.maximumf %14, %15 : vector<64x64xf32>
    %17 = arith.truncf %16 : vector<64x64xf32> to vector<64x64xbf16>
    %c0_12 = arith.constant 0 : index
    %c0_13 = arith.constant 0 : index
    %18 = vector.load %arg6[%c0_12, %c0_13] : memref<64x32xbf16, #tpu.memory_space<vmem>>, vector<64x32xbf16>
    %cst_14 = arith.constant dense<0.000000e+00> : vector<64x32xf32>
    %19 = tpu.matmul %17, %18, %cst_14 {dimension_numbers = #tpu.dot_dimension_numbers<[1], [0], [0], [1], [0, 0, 1, 1], [], []>} : vector<64x64xbf16>, vector<64x32xbf16>, vector<64x32xf32> -> vector<64x32xf32>
    %c0_15 = arith.constant 0 : index
    %c0_16 = arith.constant 0 : index
    %20 = vector.load %arg7[%c0_15, %c0_16] : memref<1x32xf32, #tpu.memory_space<vmem>>, vector<1x32xf32>
    %21 = vector.broadcast %20 : vector<1x32xf32> to vector<64x32xf32>
    %22 = arith.addf %19, %21 : vector<64x32xf32>
    %cst_17 = arith.constant 0.000000e+00 : f32
    %23 = vector.broadcast %cst_17 : f32 to vector<64x32xf32>
    %24 = arith.maximumf %22, %23 : vector<64x32xf32>
    %25 = arith.truncf %24 : vector<64x32xf32> to vector<64x32xbf16>
    %c0_18 = arith.constant 0 : index
    %c0_19 = arith.constant 0 : index
    %26 = vector.load %arg8[%c0_18, %c0_19] : memref<32x16xbf16, #tpu.memory_space<vmem>>, vector<32x16xbf16>
    %cst_20 = arith.constant dense<0.000000e+00> : vector<64x16xf32>
    %27 = tpu.matmul %25, %26, %cst_20 {dimension_numbers = #tpu.dot_dimension_numbers<[1], [0], [0], [1], [0, 0, 1, 1], [], []>} : vector<64x32xbf16>, vector<32x16xbf16>, vector<64x16xf32> -> vector<64x16xf32>
    %c0_21 = arith.constant 0 : index
    %c0_22 = arith.constant 0 : index
    %28 = vector.load %arg9[%c0_21, %c0_22] : memref<1x16xf32, #tpu.memory_space<vmem>>, vector<1x16xf32>
    %29 = vector.broadcast %28 : vector<1x16xf32> to vector<64x16xf32>
    %30 = arith.addf %27, %29 : vector<64x16xf32>
    %cst_23 = arith.constant 0.000000e+00 : f32
    %31 = vector.broadcast %cst_23 : f32 to vector<64x16xf32>
    %32 = arith.maximumf %30, %31 : vector<64x16xf32>
    %33 = arith.truncf %32 : vector<64x16xf32> to vector<64x16xbf16>
    %c0_24 = arith.constant 0 : index
    %c0_25 = arith.constant 0 : index
    %34 = vector.load %arg10[%c0_24, %c0_25] : memref<16x8xbf16, #tpu.memory_space<vmem>>, vector<16x8xbf16>
    %cst_26 = arith.constant dense<0.000000e+00> : vector<64x8xf32>
    %35 = tpu.matmul %33, %34, %cst_26 {dimension_numbers = #tpu.dot_dimension_numbers<[1], [0], [0], [1], [0, 0, 1, 1], [], []>} : vector<64x16xbf16>, vector<16x8xbf16>, vector<64x8xf32> -> vector<64x8xf32>
    %c0_27 = arith.constant 0 : index
    %c0_28 = arith.constant 0 : index
    %36 = vector.load %arg11[%c0_27, %c0_28] : memref<1x8xf32, #tpu.memory_space<vmem>>, vector<1x8xf32>
    %37 = vector.broadcast %36 : vector<1x8xf32> to vector<64x8xf32>
    %38 = arith.addf %35, %37 : vector<64x8xf32>
    %c0_29 = arith.constant 0 : index
    %c0_30 = arith.constant 0 : index
    %39 = vector.load %arg12[%c0_29, %c0_30] : memref<64x8xf32, #tpu.memory_space<vmem>>, vector<64x8xf32>
    tpu.vector_store %arg12[%c0_29, %c0_30], %38 {strides = array<i32>} : memref<64x8xf32, #tpu.memory_space<vmem>>, vector<64x8xf32>,
    return
  }
  func.func @transform_0(%arg0: i32) -> (i32, i32) {
    %c0_i32 = arith.constant 0 : i32
    %c0_i32_0 = arith.constant 0 : i32
    return %arg0, %c0_i32 : i32, i32
  }
  func.func @transform_1(%arg0: i32) -> (i32, i32) {
    %c0_i32 = arith.constant 0 : i32
    %c0_i32_0 = arith.constant 0 : i32
    %c0_i32_1 = arith.constant 0 : i32
    return %c0_i32, %c0_i32_0 : i32, i32
  }
  func.func @transform_2(%arg0: i32) -> (i32, i32) {
    %c0_i32 = arith.constant 0 : i32
    %c0_i32_0 = arith.constant 0 : i32
    %c0_i32_1 = arith.constant 0 : i32
    return %c0_i32, %c0_i32_0 : i32, i32
  }
  func.func @transform_3(%arg0: i32) -> (i32, i32) {
    %c0_i32 = arith.constant 0 : i32
    %c0_i32_0 = arith.constant 0 : i32
    %c0_i32_1 = arith.constant 0 : i32
    return %c0_i32, %c0_i32_0 : i32, i32
  }
  func.func @transform_4(%arg0: i32) -> (i32, i32) {
    %c0_i32 = arith.constant 0 : i32
    %c0_i32_0 = arith.constant 0 : i32
    %c0_i32_1 = arith.constant 0 : i32
    return %c0_i32, %c0_i32_0 : i32, i32
  }
  func.func @transform_5(%arg0: i32) -> (i32, i32) {
    %c0_i32 = arith.constant 0 : i32
    %c0_i32_0 = arith.constant 0 : i32
    %c0_i32_1 = arith.constant 0 : i32
    return %c0_i32, %c0_i32_0 : i32, i32
  }
  func.func @transform_6(%arg0: i32) -> (i32, i32) {
    %c0_i32 = arith.constant 0 : i32
    %c0_i32_0 = arith.constant 0 : i32
    %c0_i32_1 = arith.constant 0 : i32
    return %c0_i32, %c0_i32_0 : i32, i32
  }
  func.func @transform_7(%arg0: i32) -> (i32, i32) {
    %c0_i32 = arith.constant 0 : i32
    %c0_i32_0 = arith.constant 0 : i32
    %c0_i32_1 = arith.constant 0 : i32
    return %c0_i32, %c0_i32_0 : i32, i32
  }
  func.func @transform_8(%arg0: i32) -> (i32, i32) {
    %c0_i32 = arith.constant 0 : i32
    %c0_i32_0 = arith.constant 0 : i32
    %c0_i32_1 = arith.constant 0 : i32
    return %c0_i32, %c0_i32_0 : i32, i32
  }
  func.func @transform_9(%arg0: i32) -> (i32, i32) {
    %c0_i32 = arith.constant 0 : i32
    %c0_i32_0 = arith.constant 0 : i32
    %c0_i32_1 = arith.constant 0 : i32
    return %c0_i32, %c0_i32_0 : i32, i32
  }
  func.func @transform_10(%arg0: i32) -> (i32, i32) {
    %c0_i32 = arith.constant 0 : i32
    %c0_i32_0 = arith.constant 0 : i32
    %c0_i32_1 = arith.constant 0 : i32
    return %c0_i32, %c0_i32_0 : i32, i32
  }
  func.func @transform_11(%arg0: i32) -> (i32, i32) {
    %c0_i32 = arith.constant 0 : i32
    %c0_i32_0 = arith.constant 0 : i32
    return %arg0, %c0_i32 : i32, i32
  }
}

</mosaic_0001>

<bundles_post_ra>
// kernel: tpu_custom_call.1
= control target key start
LH: loop header
LB: loop body
LE: loop exit
PB: predicated region body
PF: predicated region fallthrough
CT: control target
= control target key end

     0   :  { %s1059_s17 = smov 0   ;;  %s1173_s0 = inlined_call_operand.vmem [shape: f32[128,9], index: 0, kind: input, shape index: {}]   ;;  %s1174_s1 = inlined_call_operand.vmem [shape: bf16[9,128], index: 1, kind: input, shape index: {}]   ;;  %s1175_s2 = inlined_call_operand.vmem [shape: f32[1,128], index: 2, kind: input, shape index: {}]   ;;  %s1176_s3 = inlined_call_operand.vmem [shape: bf16[128,64], index: 3, kind: input, shape index: {}]   ;;  %s1177_s4 = inlined_call_operand.vmem [shape: f32[1,64], index: 4, kind: input, shape index: {}]   ;;  %s1178_s5 = inlined_call_operand.vmem [shape: bf16[64,32], index: 5, kind: input, shape index: {}]   ;;  %s1179_s6 = inlined_call_operand.vmem [shape: f32[1,32], index: 6, kind: input, shape index: {}]   ;;  %s1180_s7 = inlined_call_operand.vmem [shape: bf16[32,16], index: 7, kind: input, shape index: {}]   ;;  %s1181_s8 = inlined_call_operand.vmem [shape: f32[1,16], index: 8, kind: input, shape index: {}]   ;;  %s1182_s9 = inlined_call_operand.vmem [shape: bf16[16,8], index: 9, kind: input, shape index: {}]   ;;  %s1183_s10 = inlined_call_operand.vmem [shape: f32[1,8], index: 10, kind: input, shape index: {}]   ;;  %s1184_s11 = inlined_call_operand.vmem [shape: f32[128,8], index: 11, kind: output, shape index: {}]  }
   0x1 LB: > { %s867_s18 = sadd.s32 4294967295, %s996_s17   ;;  %p871_p0 = scmp.ge.s32.totalorder %s996_s17, 1  ;;  %s996_s17 = sphi %s1059_s17, %s21_s17  }
   0x2   : > { %p338_p1 = scmp.lt.s32.totalorder %s996_s17, 3 }
   0x4   : > { %p339_p2 = pnand %p871_p0, %p338_p1 }
   0x5   : > { %s872_s23 = sshll.u32 (!%p339_p2), %s867_s18, 3 }
   0x6   : > { %342 = sbr.rel (%p339_p2) target bundleno = 777 (0x309), region = 64  ;;  %p379_p3 = scmp.lt.s32.totalorder (!%p339_p2), %s872_s23, 15 }
   0xb   : > { %v878_v0 = vld [vmem:[%s1174_s1] sm:$0xf]  ;;  %v958_v1 = vld [vmem:[%s1174_s1] sm:$0x10]  ;;  %vm427_vm0 = vcmask 1043456   ;;  %vm428_vm1 = vcmask 1044480  }
   0xc   : > { %v879_v2 = vor.u32 %v958_v1, %v878_v0  ;;  %v966_v3 = vld [vmem:[%s1176_s3 + $0x38] sm:$0xff]  ;;  %v998_v4 = vmov 65535   ;;  %v965_v7 = vld [vmem:[%s1176_s3 + $0x30] sm:$0xff]  ;;  %s1186_s23 = smov (!%p379_p3, %s872_s23), 15  ;;  %v964_v9 = vld [vmem:[%s1176_s3 + $0x28] sm:$0xff]  ;;  %vm414_vm2 = vcmask 72704  }
   0xd   : > { %v429_v5 = vsel %vm427_vm0, 4294967295, %v998_v4  ;;  %543 = vmatpush.bf16.msra.mxu1 %v966_v3  ;;  %s873_s28 = sshll.u32 %s1186_s23, 3  ;;  %v963_v19 = vld [vmem:[%s1176_s3 + $0x20] sm:$0xff]  ;;  %v962_v23 = vld [vmem:[%s1176_s3 + $0x18] sm:$0xff]  ;;  %v961_v24 = vld [vmem:[%s1176_s3 + $0x10] sm:$0xff]  ;;  %vm620_vm3 = vcmask 523264  }
   0xe   : > { %v430_v6 = vsel %vm428_vm1, %v429_v5, 0  ;;  %s382_s12 = scalar_lea.vmem %s1173_s0, %s873_s28  ;;  %v960_v25 = vld [vmem:[%s1176_s3 + $0x8] sm:$0xff]  ;;  %v959_v26 = vld [vmem:[%s1176_s3] sm:$0xff]  ;;  %v970_v44 = vld [vmem:[%s1178_s5 + $0x18] sm:$0xff]  ;;  %vm694_vm4 = vcmask 261120   ;;  %vm760_vm5 = vcmask 130048   ;;  %s388_s20 = scalar_lea.vmem %s1184_s11, %s873_s28 }
   0xf   : > { %v432_v8 = vand.u32 %v879_v2, %v430_v6  ;;  %v391_v10 = vld [vmem:[%s382_s12] sm:$0xff]  ;;  %v392_v11 = vld [vmem:[%s382_s12 + $0x8] sm:$0xff]  ;;  %v393_v12 = vld [vmem:[%s382_s12 + $0x10] sm:$0xff]  ;;  %vm802_vm6 = vcmask 64512  }
  0x10   : > { %v399_v13 = vpack.c.bf16 %v392_v11, %v391_v10  ;;  %v394_v14 = vld [vmem:[%s382_s12 + $0x18] sm:$0xff]  ;;  %v395_v15 = vld [vmem:[%s382_s12 + $0x20] sm:$0xff]  ;;  %v396_v16 = vld [vmem:[%s382_s12 + $0x28] sm:$0xff] }
  0x11   : > { %441 = vmatpush.bf16.msra.mxu0 %v432_v8  ;;  %974 = vmatpush.bf16.msra.mxu2 %v432_v8  ;;  %v400_v17 = vpack.c.bf16 %v394_v14, %v393_v12  ;;  %v401_v18 = vpack.c.bf16 %v396_v16, %v395_v15  ;;  %v397_v20 = vld [vmem:[%s382_s12 + $0x30] sm:$0xff]  ;;  %v398_v21 = vld [vmem:[%s382_s12 + $0x38] sm:$0xff]  ;;  %v985_v28 = vld [vmem:[%s1175_s2] ss:$0 sm:$0xff] }
  0x12   : > { %975 = vmatpush.bf16.msra.mxu3 %v432_v8  ;;  %544 = vmatpush.bf16.msra.mxu1 %v965_v7  ;;  %v402_v22 = vpack.c.bf16 %v398_v21, %v397_v20  ;;  %v969_v57 = vld [vmem:[%s1178_s5 + $0x10] sm:$0xff]  ;;  %v968_v58 = vld [vmem:[%s1178_s5 + $0x8] sm:$0xff]  ;;  %v967_v59 = vld [vmem:[%s1178_s5] sm:$0xff] }
  0x13   : > { %v986_v61 = vld [vmem:[%s1177_s4] ss:$0 sm:$0xff]  ;;  %v972_v11 = vld [vmem:[%s1180_s7 + $0x8] sm:$0xff] }
  0x14   : > { %880 = vmatmul.msk.bf16.vlgmr.msra.gmra.mxu0 %vm414_vm2, %v399_v13  ;;  %881 = vmatmul.msk.bf16.vlgmr.msra.gmra.mxu2 %vm414_vm2, %v400_v17  ;;  %v971_v13 = vld [vmem:[%s1180_s7] sm:$0xff] }
  0x15   : > { %882 = vmatmul.msk.bf16.vlgmr.msra.gmra.mxu3 %vm414_vm2, %v401_v18  ;;  %637 = vmatpush.bf16.msrb.mxu2 %v970_v44 }
  0x16   : > { %545 = vmatpush.bf16.msra.mxu1 %v964_v9  ;;  %713 = vmatpush.bf16.msrb.mxu3 %v972_v11 }
  0x19   : > { %638 = vmatpush.bf16.msrb.mxu2 %v969_v57 }
  0x1a   : > { %546 = vmatpush.bf16.msra.mxu1 %v963_v19  ;;  %714 = vmatpush.bf16.msrb.mxu3 %v971_v13 }
  0x1d   : > { %639 = vmatpush.bf16.msrb.mxu2 %v968_v58  ;;  %v988_v58 = vld [vmem:[%s1181_s8] ss:$0 sm:$0xff] }
  0x1e   : > { %547 = vmatpush.bf16.msra.mxu1 %v962_v23 }
  0x21   : > { %640 = vmatpush.bf16.msrb.mxu2 %v967_v59 }
  0x22   : > { %548 = vmatpush.bf16.msra.mxu1 %v961_v24 }
  0x25   : > { %883 = vmatmul.msk.bf16.gmra.mxu3 %vm414_vm2, %v402_v22 }
  0x26   : > { %549 = vmatpush.bf16.msra.mxu1 %v960_v25 }
  0x2a   : > { %550 = vmatpush.bf16.msra.mxu1 %v959_v26 }
  0x91   : > { %v443_v27 = vpop.f32.mrf.mxu0 }
  0x92   : > { %v444_v29 = vadd.f32 %v985_v28, %v443_v27 }
  0x94   : > { %v463_v33 = vmax.f32 %v444_v29, 0.0 }
  0x97   : > { %v448_v31 = vpop.f32.mrf.mxu2 }
  0x98   : > { %v453_v37 = vpop.f32.mrf.mxu3  ;;  %v449_v38 = vadd.f32 %v985_v28, %v448_v31 }
  0x99   : > { %v445_v30 = vpop.f32.mrf.mxu0  ;;  %v454_v45 = vadd.f32 %v985_v28, %v453_v37 }
  0x9a   : > { %v446_v32 = vadd.f32 %v985_v28, %v445_v30  ;;  %v465_v40 = vmax.f32 %v449_v38, 0.0 }
  0x9b   : > { %v467_v48 = vmax.f32 %v454_v45, 0.0 }
  0x9c   : > { %v464_v34 = vmax.f32 %v446_v32, 0.0 }
  0x9e   : > { %v471_v35 = vpack.c.bf16 %v464_v34, %v463_v33 }
  0x9f   : > { %v450_v36 = vpop.f32.mrf.mxu2 }
  0xa0   : > { %551 = vmatmul.bf16.vlgmr.msra.gmra.mxu1 %v471_v35  ;;  %v451_v39 = vadd.f32 %v985_v28, %v450_v36  ;;  %v455_v43 = vpop.f32.mrf.mxu3 }
  0xa1   : > { %v456_v46 = vadd.f32 %v985_v28, %v455_v43 }
  0xa2   : > { %v466_v41 = vmax.f32 %v451_v39, 0.0 }
  0xa3   : > { %v468_v49 = vmax.f32 %v456_v46, 0.0 }
  0xa4   : > { %v472_v42 = vpack.c.bf16 %v466_v41, %v465_v40 }
  0xa5   : > { %v473_v50 = vpack.c.bf16 %v468_v49, %v467_v48 }
  0xa8   : > { %v458_v47 = vpop.f32.mrf.mxu3 }
  0xa9   : > { %v459_v52 = vadd.f32 %v985_v28, %v458_v47 }
  0xab   : > { %v469_v54 = vmax.f32 %v459_v52, 0.0 }
  0xb0   : > { %556 = vmatmul.bf16.gmra.mxu1 %v472_v42  ;;  %v460_v51 = vpop.f32.mrf.mxu3  ;;  %v973_v42 = vld [vmem:[%s1182_s9] sm:$0xff] }
  0xb1   : > { %v461_v53 = vadd.f32 %v985_v28, %v460_v51  ;;  %v987_v28 = vld [vmem:[%s1179_s6] ss:$0 sm:$0xff]  ;;  %780 = vmatpush.bf16.msrb.mxu0 %v973_v42 }
  0xb3   : > { %v470_v55 = vmax.f32 %v461_v53, 0.0 }
  0xb5   : > { %v474_v56 = vpack.c.bf16 %v470_v55, %v469_v54 }
  0xc0   : > { %561 = vmatmul.bf16.gmra.mxu1 %v473_v50 }
  0xd0   : > { %566 = vmatmul.bf16.gmra.mxu1 %v474_v56 }
 0x11d   : > { %v552_v60 = vpop.f32.mrf.mxu1 }
 0x11e   : > { %v553_v62 = vadd.f32 %v986_v61, %v552_v60 }
 0x120   : > { %v572_v1 = vmax.f32 %v553_v62, 0.0 }
 0x125   : > { %v554_v63 = vpop.f32.mrf.mxu1 }
 0x126   : > { %v555_v0 = vadd.f32 %v986_v61, %v554_v63 }
 0x128   : > { %v573_v2 = vmax.f32 %v555_v0, 0.0 }
 0x12a   : > { %v580_v3 = vpack.c.bf16 %v573_v2, %v572_v1 }
 0x12c   : > { %932 = vmatmul.msk.bf16.vlgmr.msrb.gmra.mxu2 %vm620_vm3, %v580_v3 }
 0x12d   : > { %v557_v4 = vpop.f32.mrf.mxu1 }
 0x12e   : > { %v558_v5 = vadd.f32 %v986_v61, %v557_v4 }
 0x130   : > { %v574_v8 = vmax.f32 %v558_v5, 0.0 }
 0x135   : > { %v559_v6 = vpop.f32.mrf.mxu1 }
 0x136   : > { %v560_v7 = vadd.f32 %v986_v61, %v559_v6 }
 0x138   : > { %v575_v9 = vmax.f32 %v560_v7, 0.0 }
 0x13a   : > { %v581_v10 = vpack.c.bf16 %v575_v9, %v574_v8 }
 0x13c   : > { %933 = vmatmul.msk.bf16.gmra.mxu2 %vm620_vm3, %v581_v10 }
 0x13d   : > { %v562_v12 = vpop.f32.mrf.mxu1 }
 0x13e   : > { %v563_v14 = vadd.f32 %v986_v61, %v562_v12 }
 0x140   : > { %v576_v17 = vmax.f32 %v563_v14, 0.0 }
 0x145   : > { %v564_v15 = vpop.f32.mrf.mxu1 }
 0x146   : > { %v565_v16 = vadd.f32 %v986_v61, %v564_v15 }
 0x148   : > { %v577_v18 = vmax.f32 %v565_v16, 0.0 }
 0x14a   : > { %v582_v19 = vpack.c.bf16 %v577_v18, %v576_v17 }
 0x14c   : > { %934 = vmatmul.msk.bf16.gmra.mxu2 %vm620_vm3, %v582_v19 }
 0x14d   : > { %v567_v20 = vpop.f32.mrf.mxu1 }
 0x14e   : > { %v568_v21 = vadd.f32 %v986_v61, %v567_v20 }
 0x150   : > { %v578_v24 = vmax.f32 %v568_v21, 0.0 }
 0x155   : > { %v569_v22 = vpop.f32.mrf.mxu1 }
 0x156   : > { %v570_v23 = vadd.f32 %v986_v61, %v569_v22  ;;  %v989_v22 = vld [vmem:[%s1183_s10] ss:$0 sm:$0xff] }
 0x158   : > { %v579_v25 = vmax.f32 %v570_v23, 0.0 }
 0x15a   : > { %v583_v26 = vpack.c.bf16 %v579_v25, %v578_v24 }
 0x15c   : > { %935 = vmatmul.msk.bf16.gmra.mxu2 %vm620_vm3, %v583_v26 }
 0x1af   : > { %v642_v27 = vpop.f32.mrf.mxu2 }
 0x1b0   : > { %v643_v29 = vadd.f32 %v987_v28, %v642_v27 }
 0x1b2   : > { %v662_v32 = vmax.f32 %v643_v29, 0.0 }
 0x1b7   : > { %v644_v30 = vpop.f32.mrf.mxu2 }
 0x1b8   : > { %v645_v31 = vadd.f32 %v987_v28, %v644_v30 }
 0x1ba   : > { %v663_v33 = vmax.f32 %v645_v31, 0.0 }
 0x1bc   : > { %v670_v34 = vpack.c.bf16 %v663_v33, %v662_v32 }
 0x1be   : > { %944 = vmatmul.msk.bf16.vlgmr.msrb.gmra.mxu3 %vm694_vm4, %v670_v34 }
 0x1bf   : > { %v647_v35 = vpop.f32.mrf.mxu2 }
 0x1c0   : > { %v648_v36 = vadd.f32 %v987_v28, %v647_v35 }
 0x1c2   : > { %v664_v39 = vmax.f32 %v648_v36, 0.0 }
 0x1c7   : > { %v649_v37 = vpop.f32.mrf.mxu2 }
 0x1c8   : > { %v650_v38 = vadd.f32 %v987_v28, %v649_v37 }
 0x1ca   : > { %v665_v40 = vmax.f32 %v650_v38, 0.0 }
 0x1cc   : > { %v671_v41 = vpack.c.bf16 %v665_v40, %v664_v39 }
 0x1ce   : > { %945 = vmatmul.msk.bf16.gmra.mxu3 %vm694_vm4, %v671_v41 }
 0x1cf   : > { %v652_v43 = vpop.f32.mrf.mxu2 }
 0x1d0   : > { %v653_v44 = vadd.f32 %v987_v28, %v652_v43 }
 0x1d2   : > { %v666_v47 = vmax.f32 %v653_v44, 0.0 }
 0x1d7   : > { %v654_v45 = vpop.f32.mrf.mxu2 }
 0x1d8   : > { %v655_v46 = vadd.f32 %v987_v28, %v654_v45 }
 0x1da   : > { %v667_v48 = vmax.f32 %v655_v46, 0.0 }
 0x1dc   : > { %v672_v49 = vpack.c.bf16 %v667_v48, %v666_v47 }
 0x1de   : > { %946 = vmatmul.msk.bf16.gmra.mxu3 %vm694_vm4, %v672_v49 }
 0x1df   : > { %v657_v50 = vpop.f32.mrf.mxu2 }
 0x1e0   : > { %v658_v51 = vadd.f32 %v987_v28, %v657_v50 }
 0x1e2   : > { %v668_v54 = vmax.f32 %v658_v51, 0.0 }
 0x1e7   : > { %v659_v52 = vpop.f32.mrf.mxu2 }
 0x1e8   : > { %v660_v53 = vadd.f32 %v987_v28, %v659_v52 }
 0x1ea   : > { %v669_v55 = vmax.f32 %v660_v53, 0.0 }
 0x1ec   : > { %v673_v56 = vpack.c.bf16 %v669_v55, %v668_v54 }
 0x1ee   : > { %947 = vmatmul.msk.bf16.gmra.mxu3 %vm694_vm4, %v673_v56 }
 0x241   : > { %v716_v57 = vpop.f32.mrf.mxu3 }
 0x242   : > { %v717_v59 = vadd.f32 %v988_v58, %v716_v57 }
 0x244   : > { %v736_v62 = vmax.f32 %v717_v59, 0.0 }
 0x249   : > { %v718_v60 = vpop.f32.mrf.mxu3 }
 0x24a   : > { %v719_v61 = vadd.f32 %v988_v58, %v718_v60 }
 0x24c   : > { %v737_v63 = vmax.f32 %v719_v61, 0.0 }
 0x24e   : > { %v744_v0 = vpack.c.bf16 %v737_v63, %v736_v62 }
 0x250   : > { %952 = vmatmul.msk.bf16.vlgmr.msrb.gmra.mxu0 %vm760_vm5, %v744_v0 }
 0x251   : > { %v721_v1 = vpop.f32.mrf.mxu3 }
 0x252   : > { %v722_v2 = vadd.f32 %v988_v58, %v721_v1 }
 0x254   : > { %v738_v5 = vmax.f32 %v722_v2, 0.0 }
 0x259   : > { %v723_v3 = vpop.f32.mrf.mxu3 }
 0x25a   : > { %v724_v4 = vadd.f32 %v988_v58, %v723_v3 }
 0x25c   : > { %v739_v6 = vmax.f32 %v724_v4, 0.0 }
 0x25e   : > { %v745_v7 = vpack.c.bf16 %v739_v6, %v738_v5 }
 0x260   : > { %953 = vmatmul.msk.bf16.gmra.mxu0 %vm760_vm5, %v745_v7 }
 0x261   : > { %v726_v8 = vpop.f32.mrf.mxu3 }
 0x262   : > { %v727_v9 = vadd.f32 %v988_v58, %v726_v8 }
 0x264   : > { %v740_v12 = vmax.f32 %v727_v9, 0.0 }
 0x269   : > { %v728_v10 = vpop.f32.mrf.mxu3 }
 0x26a   : > { %v729_v11 = vadd.f32 %v988_v58, %v728_v10 }
 0x26c   : > { %v741_v13 = vmax.f32 %v729_v11, 0.0 }
 0x26e   : > { %v746_v14 = vpack.c.bf16 %v741_v13, %v740_v12 }
 0x270   : > { %954 = vmatmul.msk.bf16.gmra.mxu0 %vm760_vm5, %v746_v14 }
 0x271   : > { %v731_v15 = vpop.f32.mrf.mxu3 }
 0x272   : > { %v732_v16 = vadd.f32 %v988_v58, %v731_v15 }
 0x274   : > { %v742_v19 = vmax.f32 %v732_v16, 0.0 }
 0x279   : > { %v733_v17 = vpop.f32.mrf.mxu3 }
 0x27a   : > { %v734_v18 = vadd.f32 %v988_v58, %v733_v17 }
 0x27c   : > { %v743_v20 = vmax.f32 %v734_v18, 0.0 }
 0x27e   : > { %v747_v21 = vpack.c.bf16 %v743_v20, %v742_v19 }
 0x280   : > { %955 = vmatmul.msk.bf16.gmra.mxu0 %vm760_vm5, %v747_v21 }
 0x2cd   : > { %v782_v23 = vpop.f32.mrf.mxu0 }
 0x2ce   : > { %v783_v24 = vadd.f32 %v989_v22, %v782_v23 }
 0x2d0   : > { %803 = vst.msk [vmem:[%s388_s20] sm:$0xff] %vm802_vm6, %v783_v24 }
 0x2d5   : > { %v784_v25 = vpop.f32.mrf.mxu0 }
 0x2d6   : > { %v785_v26 = vadd.f32 %v989_v22, %v784_v25 }
 0x2d8   : > { %804 = vst.msk [vmem:[%s388_s20 + $0x8] sm:$0xff] %vm802_vm6, %v785_v26 }
 0x2dd   : > { %v787_v27 = vpop.f32.mrf.mxu0 }
 0x2de   : > { %v788_v28 = vadd.f32 %v989_v22, %v787_v27 }
 0x2e0   : > { %805 = vst.msk [vmem:[%s388_s20 + $0x10] sm:$0xff] %vm802_vm6, %v788_v28 }
 0x2e5   : > { %v789_v29 = vpop.f32.mrf.mxu0 }
 0x2e6   : > { %v790_v30 = vadd.f32 %v989_v22, %v789_v29 }
 0x2e8   : > { %806 = vst.msk [vmem:[%s388_s20 + $0x18] sm:$0xff] %vm802_vm6, %v790_v30 }
 0x2ed   : > { %v792_v31 = vpop.f32.mrf.mxu0 }
 0x2ee   : > { %v793_v32 = vadd.f32 %v989_v22, %v792_v31 }
 0x2f0   : > { %807 = vst.msk [vmem:[%s388_s20 + $0x20] sm:$0xff] %vm802_vm6, %v793_v32 }
 0x2f5   : > { %v794_v33 = vpop.f32.mrf.mxu0 }
 0x2f6   : > { %v795_v34 = vadd.f32 %v989_v22, %v794_v33 }
 0x2f8   : > { %808 = vst.msk [vmem:[%s388_s20 + $0x28] sm:$0xff] %vm802_vm6, %v795_v34 }
 0x2fd   : > { %v797_v35 = vpop.f32.mrf.mxu0 }
 0x2fe   : > { %v798_v36 = vadd.f32 %v989_v22, %v797_v35 }
 0x300   : > { %809 = vst.msk [vmem:[%s388_s20 + $0x30] sm:$0xff] %vm802_vm6, %v798_v36 }
 0x305   : > { %v799_v37 = vpop.f32.mrf.mxu0 }
 0x306   : > { %v800_v38 = vadd.f32 %v989_v22, %v799_v37 }
 0x308   : > { %810 = vst.msk [vmem:[%s388_s20 + $0x38] sm:$0xff] %vm802_vm6, %v800_v38 }
 0x309 PF: > { %s21_s17 = sadd.s32 1, %s996_s17  }
 0x30a   : > { %p18_p4 = scmp.ge.s32.totalorder %s21_s17, 4  }
 0x30c   :  { %20 = sbr.rel (!%p18_p4) target bundleno = 1 (0x1), region = 94 }

</bundles_post_ra>
